<compile_context>
chip_gen: v7x
topology: tpu7x:2x2x1
jax: 0.10.0
libtpu: 0.0.40
codegen_flags: <defaults>
</compile_context>

<pallas_src>
import functools

import jax
import jax.numpy as jnp
from jax.experimental import pallas as pl
from jax.experimental.pallas import tpu as pltpu

C_OUT = 3
KH = KW = 3


def conv2d_kernel(w_ref, b_ref, x_ref, o_ref, *, H, W):
    # x_ref: (N, HWp)        f32 VMEM  -- lane-dense flattened images (HWp % 128 == 0)
    # w_ref: (C_OUT*KH*KW,)  f32 SMEM  -- scalar taps
    # b_ref: (C_OUT,)        f32 SMEM
    # o_ref: (C_OUT*N, HWp)  f32 VMEM  -- channel-major sublane slabs
    N, HWp = x_ref.shape
    HW = H * W
    x = x_ref[...]  # single lane-dense load of all images

    # Flat-index bookkeeping for the implicit zero padding (padding=1).
    pos = jax.lax.broadcasted_iota(jnp.int32, (N, HWp), dimension=1)
    if (W & (W - 1)) == 0:  # power-of-two fast path: avoid int32 div/mod
        col = pos & (W - 1)
        row = pos >> (W.bit_length() - 1)
    else:
        col = pos % W
        row = pos // W
    col_ok = {-1: col >= 1, 0: None, 1: col <= W - 2}
    row_ok = {-1: row >= 1, 0: None, 1: row <= H - 2}

    # Build the 9 shifted windows ONCE (hoisted out of the channel loop).
    # Tap (dh, dw) needs x[i+dh, j+dw] == x_flat[p + dh*W + dw]; we get it with
    # a lane roll and zero the wrapped / out-of-image positions, which also
    # realizes the zero padding.  All wrap-around lanes (including those that
    # cross into the HW..HWp pad region) correspond to masked border positions.
    windows = []
    for dh in (-1, 0, 1):
        for dw in (-1, 0, 1):
            d = dh * W + dw
            shifted = x if d == 0 else pltpu.roll(x, shift=(-d) % HWp, axis=1)
            valid = None
            for m in (row_ok[dh], col_ok[dw]):
                if m is not None:
                    valid = m if valid is None else (valid & m)
            windows.append(
                shifted if valid is None else jnp.where(valid, shifted, 0.0))

    # 3 output channels x 9 scalar-broadcast multiply/adds against the cached
    # windows; each channel is stored directly as a contiguous sublane slab
    # (no jnp.stack / relayout).
    for c in range(C_OUT):
        acc = jnp.full((N, HWp), b_ref[c], jnp.float32)
        for k in range(KH * KW):
            acc = acc + w_ref[c * KH * KW + k] * windows[k]
        o_ref[pl.ds(c * N, N), :] = acc
    del HW  # (padded tail lanes carry don't-care values; sliced off in wrapper)


def conv2d_pallas(x, weight, bias):
    """x: (N, 1, H, W) f32; weight: (3, 1, 3, 3) f32; bias: (3,) f32 -> (N, 3, H, W) f32"""
    N, Cin, H, W = x.shape
    assert Cin == 1
    HW = H * W
    HWp = ((HW + 127) // 128) * 128  # keep the lane dim a multiple of 128

    x_flat = x.reshape(N, HW).astype(jnp.float32)
    if HWp != HW:
        x_flat = jnp.pad(x_flat, ((0, 0), (0, HWp - HW)))
    w_flat = weight.reshape(-1).astype(jnp.float32)   # (27,) scalar taps
    b = bias.astype(jnp.float32)                      # (3,)

    out = pl.pallas_call(
        functools.partial(conv2d_kernel, H=H, W=W),
        out_shape=jax.ShapeDtypeStruct((C_OUT * N, HWp), jnp.float32),
        in_specs=[
            pl.BlockSpec(memory_space=pltpu.MemorySpace.SMEM),   # weights
            pl.BlockSpec(memory_space=pltpu.MemorySpace.SMEM),   # bias
            pl.BlockSpec(memory_space=pltpu.MemorySpace.VMEM),   # images
        ],
        out_specs=pl.BlockSpec(memory_space=pltpu.MemorySpace.VMEM),
    )(w_flat, b, x_flat)

    # (C_OUT*N, HWp) -> (C_OUT, N, H, W) -> (N, C_OUT, H, W): wrapper-side
    # layout plumbing, outside the kernel.
    out = out[:, :HW].reshape(C_OUT, N, H, W)
    return jnp.transpose(out, (1, 0, 2, 3))


def conv2d_reference(x, weight, bias):
    # pure-JAX reference (NCHW, OIHW) for correctness check
    out = jax.lax.conv_general_dilated(
        x, weight, window_strides=(1, 1), padding=((1, 1), (1, 1)),
        dimension_numbers=("NCHW", "OIHW", "NCHW"))
    return out + bias.reshape(1, -1, 1, 1)


if __name__ == "__main__":
    key = jax.random.PRNGKey(0)
    kx, kw, kb = jax.random.split(key, 3)

    # Conv2d(1, 3, 3) parameter shapes: weight (3,1,3,3), bias (3,)
    fan_in = 1 * KH * KW
    bound = 1.0 / (fan_in ** 0.5)
    weight = jax.random.uniform(kw, (C_OUT, 1, KH, KW), jnp.float32, -bound, bound)
    bias = jax.random.uniform(kb, (C_OUT,), jnp.float32, -bound, bound)

    # small input consistent with the module: N=2, C=1, H=W=16
    x = jax.random.normal(kx, (2, 1, 16, 16), jnp.float32)

    out = jax.block_until_ready(conv2d_pallas(x, weight, bias))

    ref = conv2d_reference(x, weight, bias)
    assert out.shape == (2, 3, 16, 16)
    assert jnp.allclose(out, ref, atol=1e-5, rtol=1e-5)

    print("KERNEL_OK")
</pallas_src>

<mosaic_0001>
module attributes {stable_mosaic.version = 11 : i64} {
  func.func @conv2d_kernel(%arg0: memref<27xf32, #tpu.memory_space<smem>>, %arg1: memref<3xf32, #tpu.memory_space<smem>>, %arg2: memref<2x256xf32, #tpu.memory_space<vmem>>, %arg3: memref<6x256xf32, #tpu.memory_space<vmem>>) attributes {dimension_semantics = [], scalar_prefetch = 0 : i64, scratch_operands = 0 : i64, tpu.core_type = #tpu.core_type<tc>} {
    %c0 = arith.constant 0 : index
    %c0_0 = arith.constant 0 : index
    %0 = vector.load %arg2[%c0, %c0_0] : memref<2x256xf32, #tpu.memory_space<vmem>>, vector<2x256xf32>
    %1 = tpu.iota {dimensions = array<i32: 1>} : vector<2x256xi32>
    %c15_i32 = arith.constant 15 : i32
    %2 = vector.broadcast %c15_i32 : i32 to vector<2x256xi32>
    %3 = arith.andi %1, %2 : vector<2x256xi32>
    %c4_i32 = arith.constant 4 : i32
    %4 = vector.broadcast %c4_i32 : i32 to vector<2x256xi32>
    %5 = arith.shrsi %1, %4 : vector<2x256xi32>
    %c1_i32 = arith.constant 1 : i32
    %6 = vector.broadcast %c1_i32 : i32 to vector<2x256xi32>
    %7 = arith.cmpi sge, %3, %6 : vector<2x256xi32>
    %c14_i32 = arith.constant 14 : i32
    %8 = vector.broadcast %c14_i32 : i32 to vector<2x256xi32>
    %9 = arith.cmpi sle, %3, %8 : vector<2x256xi32>
    %c1_i32_1 = arith.constant 1 : i32
    %10 = vector.broadcast %c1_i32_1 : i32 to vector<2x256xi32>
    %11 = arith.cmpi sge, %5, %10 : vector<2x256xi32>
    %c14_i32_2 = arith.constant 14 : i32
    %12 = vector.broadcast %c14_i32_2 : i32 to vector<2x256xi32>
    %13 = arith.cmpi sle, %5, %12 : vector<2x256xi32>
    %c17_i32 = arith.constant 17 : i32
    %14 = tpu.dynamic_rotate %0 by %c17_i32 dim 1 : vector<2x256xf32>, i32 -> vector<2x256xf32>
    %15 = arith.andi %11, %7 : vector<2x256xi1>
    %cst = arith.constant 0.000000e+00 : f32
    %16 = vector.broadcast %cst : f32 to vector<2x256xf32>
    %17 = arith.select %15, %14, %16 : vector<2x256xi1>, vector<2x256xf32>
    %c16_i32 = arith.constant 16 : i32
    %18 = tpu.dynamic_rotate %0 by %c16_i32 dim 1 : vector<2x256xf32>, i32 -> vector<2x256xf32>
    %cst_3 = arith.constant 0.000000e+00 : f32
    %19 = vector.broadcast %cst_3 : f32 to vector<2x256xf32>
    %20 = arith.select %11, %18, %19 : vector<2x256xi1>, vector<2x256xf32>
    %c15_i32_4 = arith.constant 15 : i32
    %21 = tpu.dynamic_rotate %0 by %c15_i32_4 dim 1 : vector<2x256xf32>, i32 -> vector<2x256xf32>
    %22 = arith.andi %11, %9 : vector<2x256xi1>
    %cst_5 = arith.constant 0.000000e+00 : f32
    %23 = vector.broadcast %cst_5 : f32 to vector<2x256xf32>
    %24 = arith.select %22, %21, %23 : vector<2x256xi1>, vector<2x256xf32>
    %c1_i32_6 = arith.constant 1 : i32
    %25 = tpu.dynamic_rotate %0 by %c1_i32_6 dim 1 : vector<2x256xf32>, i32 -> vector<2x256xf32>
    %cst_7 = arith.constant 0.000000e+00 : f32
    %26 = vector.broadcast %cst_7 : f32 to vector<2x256xf32>
    %27 = arith.select %7, %25, %26 : vector<2x256xi1>, vector<2x256xf32>
    %c255_i32 = arith.constant 255 : i32
    %28 = tpu.dynamic_rotate %0 by %c255_i32 dim 1 : vector<2x256xf32>, i32 -> vector<2x256xf32>
    %cst_8 = arith.constant 0.000000e+00 : f32
    %29 = vector.broadcast %cst_8 : f32 to vector<2x256xf32>
    %30 = arith.select %9, %28, %29 : vector<2x256xi1>, vector<2x256xf32>
    %c241_i32 = arith.constant 241 : i32
    %31 = tpu.dynamic_rotate %0 by %c241_i32 dim 1 : vector<2x256xf32>, i32 -> vector<2x256xf32>
    %32 = arith.andi %13, %7 : vector<2x256xi1>
    %cst_9 = arith.constant 0.000000e+00 : f32
    %33 = vector.broadcast %cst_9 : f32 to vector<2x256xf32>
    %34 = arith.select %32, %31, %33 : vector<2x256xi1>, vector<2x256xf32>
    %c240_i32 = arith.constant 240 : i32
    %35 = tpu.dynamic_rotate %0 by %c240_i32 dim 1 : vector<2x256xf32>, i32 -> vector<2x256xf32>
    %cst_10 = arith.constant 0.000000e+00 : f32
    %36 = vector.broadcast %cst_10 : f32 to vector<2x256xf32>
    %37 = arith.select %13, %35, %36 : vector<2x256xi1>, vector<2x256xf32>
    %c239_i32 = arith.constant 239 : i32
    %38 = tpu.dynamic_rotate %0 by %c239_i32 dim 1 : vector<2x256xf32>, i32 -> vector<2x256xf32>
    %39 = arith.andi %13, %9 : vector<2x256xi1>
    %cst_11 = arith.constant 0.000000e+00 : f32
    %40 = vector.broadcast %cst_11 : f32 to vector<2x256xf32>
    %41 = arith.select %39, %38, %40 : vector<2x256xi1>, vector<2x256xf32>
    %c0_12 = arith.constant 0 : index
    %42 = memref.load %arg1[%c0_12] : memref<3xf32, #tpu.memory_space<smem>>
    %43 = vector.broadcast %42 : f32 to vector<2x256xf32>
    %c0_13 = arith.constant 0 : index
    %44 = memref.load %arg0[%c0_13] : memref<27xf32, #tpu.memory_space<smem>>
    %45 = vector.broadcast %44 : f32 to vector<2x256xf32>
    %46 = arith.mulf %45, %17 : vector<2x256xf32>
    %47 = arith.addf %43, %46 : vector<2x256xf32>
    %c1 = arith.constant 1 : index
    %48 = memref.load %arg0[%c1] : memref<27xf32, #tpu.memory_space<smem>>
    %49 = vector.broadcast %48 : f32 to vector<2x256xf32>
    %50 = arith.mulf %49, %20 : vector<2x256xf32>
    %51 = arith.addf %47, %50 : vector<2x256xf32>
    %c2 = arith.constant 2 : index
    %52 = memref.load %arg0[%c2] : memref<27xf32, #tpu.memory_space<smem>>
    %53 = vector.broadcast %52 : f32 to vector<2x256xf32>
    %54 = arith.mulf %53, %24 : vector<2x256xf32>
    %55 = arith.addf %51, %54 : vector<2x256xf32>
    %c3 = arith.constant 3 : index
    %56 = memref.load %arg0[%c3] : memref<27xf32, #tpu.memory_space<smem>>
    %57 = vector.broadcast %56 : f32 to vector<2x256xf32>
    %58 = arith.mulf %57, %27 : vector<2x256xf32>
    %59 = arith.addf %55, %58 : vector<2x256xf32>
    %c4 = arith.constant 4 : index
    %60 = memref.load %arg0[%c4] : memref<27xf32, #tpu.memory_space<smem>>
    %61 = vector.broadcast %60 : f32 to vector<2x256xf32>
    %62 = arith.mulf %61, %0 : vector<2x256xf32>
    %63 = arith.addf %59, %62 : vector<2x256xf32>
    %c5 = arith.constant 5 : index
    %64 = memref.load %arg0[%c5] : memref<27xf32, #tpu.memory_space<smem>>
    %65 = vector.broadcast %64 : f32 to vector<2x256xf32>
    %66 = arith.mulf %65, %30 : vector<2x256xf32>
    %67 = arith.addf %63, %66 : vector<2x256xf32>
    %c6 = arith.constant 6 : index
    %68 = memref.load %arg0[%c6] : memref<27xf32, #tpu.memory_space<smem>>
    %69 = vector.broadcast %68 : f32 to vector<2x256xf32>
    %70 = arith.mulf %69, %34 : vector<2x256xf32>
    %71 = arith.addf %67, %70 : vector<2x256xf32>
    %c7 = arith.constant 7 : index
    %72 = memref.load %arg0[%c7] : memref<27xf32, #tpu.memory_space<smem>>
    %73 = vector.broadcast %72 : f32 to vector<2x256xf32>
    %74 = arith.mulf %73, %37 : vector<2x256xf32>
    %75 = arith.addf %71, %74 : vector<2x256xf32>
    %c8 = arith.constant 8 : index
    %76 = memref.load %arg0[%c8] : memref<27xf32, #tpu.memory_space<smem>>
    %77 = vector.broadcast %76 : f32 to vector<2x256xf32>
    %78 = arith.mulf %77, %41 : vector<2x256xf32>
    %79 = arith.addf %75, %78 : vector<2x256xf32>
    %c0_14 = arith.constant 0 : index
    %c0_15 = arith.constant 0 : index
    %80 = vector.load %arg3[%c0_14, %c0_15] : memref<6x256xf32, #tpu.memory_space<vmem>>, vector<2x256xf32>
    tpu.vector_store %arg3[%c0_14, %c0_15], %79 {strides = array<i32>} : memref<6x256xf32, #tpu.memory_space<vmem>>, vector<2x256xf32>,
    %c1_16 = arith.constant 1 : index
    %81 = memref.load %arg1[%c1_16] : memref<3xf32, #tpu.memory_space<smem>>
    %82 = vector.broadcast %81 : f32 to vector<2x256xf32>
    %c9 = arith.constant 9 : index
    %83 = memref.load %arg0[%c9] : memref<27xf32, #tpu.memory_space<smem>>
    %84 = vector.broadcast %83 : f32 to vector<2x256xf32>
    %85 = arith.mulf %84, %17 : vector<2x256xf32>
    %86 = arith.addf %82, %85 : vector<2x256xf32>
    %c10 = arith.constant 10 : index
    %87 = memref.load %arg0[%c10] : memref<27xf32, #tpu.memory_space<smem>>
    %88 = vector.broadcast %87 : f32 to vector<2x256xf32>
    %89 = arith.mulf %88, %20 : vector<2x256xf32>
    %90 = arith.addf %86, %89 : vector<2x256xf32>
    %c11 = arith.constant 11 : index
    %91 = memref.load %arg0[%c11] : memref<27xf32, #tpu.memory_space<smem>>
    %92 = vector.broadcast %91 : f32 to vector<2x256xf32>
    %93 = arith.mulf %92, %24 : vector<2x256xf32>
    %94 = arith.addf %90, %93 : vector<2x256xf32>
    %c12 = arith.constant 12 : index
    %95 = memref.load %arg0[%c12] : memref<27xf32, #tpu.memory_space<smem>>
    %96 = vector.broadcast %95 : f32 to vector<2x256xf32>
    %97 = arith.mulf %96, %27 : vector<2x256xf32>
    %98 = arith.addf %94, %97 : vector<2x256xf32>
    %c13 = arith.constant 13 : index
    %99 = memref.load %arg0[%c13] : memref<27xf32, #tpu.memory_space<smem>>
    %100 = vector.broadcast %99 : f32 to vector<2x256xf32>
    %101 = arith.mulf %100, %0 : vector<2x256xf32>
    %102 = arith.addf %98, %101 : vector<2x256xf32>
    %c14 = arith.constant 14 : index
    %103 = memref.load %arg0[%c14] : memref<27xf32, #tpu.memory_space<smem>>
    %104 = vector.broadcast %103 : f32 to vector<2x256xf32>
    %105 = arith.mulf %104, %30 : vector<2x256xf32>
    %106 = arith.addf %102, %105 : vector<2x256xf32>
    %c15 = arith.constant 15 : index
    %107 = memref.load %arg0[%c15] : memref<27xf32, #tpu.memory_space<smem>>
    %108 = vector.broadcast %107 : f32 to vector<2x256xf32>
    %109 = arith.mulf %108, %34 : vector<2x256xf32>
    %110 = arith.addf %106, %109 : vector<2x256xf32>
    %c16 = arith.constant 16 : index
    %111 = memref.load %arg0[%c16] : memref<27xf32, #tpu.memory_space<smem>>
    %112 = vector.broadcast %111 : f32 to vector<2x256xf32>
    %113 = arith.mulf %112, %37 : vector<2x256xf32>
    %114 = arith.addf %110, %113 : vector<2x256xf32>
    %c17 = arith.constant 17 : index
    %115 = memref.load %arg0[%c17] : memref<27xf32, #tpu.memory_space<smem>>
    %116 = vector.broadcast %115 : f32 to vector<2x256xf32>
    %117 = arith.mulf %116, %41 : vector<2x256xf32>
    %118 = arith.addf %114, %117 : vector<2x256xf32>
    %c2_17 = arith.constant 2 : index
    %c0_18 = arith.constant 0 : index
    %119 = vector.load %arg3[%c2_17, %c0_18] : memref<6x256xf32, #tpu.memory_space<vmem>>, vector<2x256xf32>
    tpu.vector_store %arg3[%c2_17, %c0_18], %118 {strides = array<i32>} : memref<6x256xf32, #tpu.memory_space<vmem>>, vector<2x256xf32>,
    %c2_19 = arith.constant 2 : index
    %120 = memref.load %arg1[%c2_19] : memref<3xf32, #tpu.memory_space<smem>>
    %121 = vector.broadcast %120 : f32 to vector<2x256xf32>
    %c18 = arith.constant 18 : index
    %122 = memref.load %arg0[%c18] : memref<27xf32, #tpu.memory_space<smem>>
    %123 = vector.broadcast %122 : f32 to vector<2x256xf32>
    %124 = arith.mulf %123, %17 : vector<2x256xf32>
    %125 = arith.addf %121, %124 : vector<2x256xf32>
    %c19 = arith.constant 19 : index
    %126 = memref.load %arg0[%c19] : memref<27xf32, #tpu.memory_space<smem>>
    %127 = vector.broadcast %126 : f32 to vector<2x256xf32>
    %128 = arith.mulf %127, %20 : vector<2x256xf32>
    %129 = arith.addf %125, %128 : vector<2x256xf32>
    %c20 = arith.constant 20 : index
    %130 = memref.load %arg0[%c20] : memref<27xf32, #tpu.memory_space<smem>>
    %131 = vector.broadcast %130 : f32 to vector<2x256xf32>
    %132 = arith.mulf %131, %24 : vector<2x256xf32>
    %133 = arith.addf %129, %132 : vector<2x256xf32>
    %c21 = arith.constant 21 : index
    %134 = memref.load %arg0[%c21] : memref<27xf32, #tpu.memory_space<smem>>
    %135 = vector.broadcast %134 : f32 to vector<2x256xf32>
    %136 = arith.mulf %135, %27 : vector<2x256xf32>
    %137 = arith.addf %133, %136 : vector<2x256xf32>
    %c22 = arith.constant 22 : index
    %138 = memref.load %arg0[%c22] : memref<27xf32, #tpu.memory_space<smem>>
    %139 = vector.broadcast %138 : f32 to vector<2x256xf32>
    %140 = arith.mulf %139, %0 : vector<2x256xf32>
    %141 = arith.addf %137, %140 : vector<2x256xf32>
    %c23 = arith.constant 23 : index
    %142 = memref.load %arg0[%c23] : memref<27xf32, #tpu.memory_space<smem>>
    %143 = vector.broadcast %142 : f32 to vector<2x256xf32>
    %144 = arith.mulf %143, %30 : vector<2x256xf32>
    %145 = arith.addf %141, %144 : vector<2x256xf32>
    %c24 = arith.constant 24 : index
    %146 = memref.load %arg0[%c24] : memref<27xf32, #tpu.memory_space<smem>>
    %147 = vector.broadcast %146 : f32 to vector<2x256xf32>
    %148 = arith.mulf %147, %34 : vector<2x256xf32>
    %149 = arith.addf %145, %148 : vector<2x256xf32>
    %c25 = arith.constant 25 : index
    %150 = memref.load %arg0[%c25] : memref<27xf32, #tpu.memory_space<smem>>
    %151 = vector.broadcast %150 : f32 to vector<2x256xf32>
    %152 = arith.mulf %151, %37 : vector<2x256xf32>
    %153 = arith.addf %149, %152 : vector<2x256xf32>
    %c26 = arith.constant 26 : index
    %154 = memref.load %arg0[%c26] : memref<27xf32, #tpu.memory_space<smem>>
    %155 = vector.broadcast %154 : f32 to vector<2x256xf32>
    %156 = arith.mulf %155, %41 : vector<2x256xf32>
    %157 = arith.addf %153, %156 : vector<2x256xf32>
    %c4_20 = arith.constant 4 : index
    %c0_21 = arith.constant 0 : index
    %158 = vector.load %arg3[%c4_20, %c0_21] : memref<6x256xf32, #tpu.memory_space<vmem>>, vector<2x256xf32>
    tpu.vector_store %arg3[%c4_20, %c0_21], %157 {strides = array<i32>} : memref<6x256xf32, #tpu.memory_space<vmem>>, vector<2x256xf32>,
    return
  }
}

</mosaic_0001>

<bundles_post_ra>
// kernel: tpu_custom_call.1
= control target key start
LH: loop header
LB: loop body
LE: loop exit
PB: predicated region body
PF: predicated region fallthrough
CT: control target
= control target key end

     0   :  { %8 = vsyncpa [#allocation4], 0  ;;  %s873_s0 = inlined_call_operand.hbm [shape: f32[27], index: 0, kind: input, shape index: {}]   ;;  %s874_s1 = inlined_call_operand.vmem [shape: f32[3], index: 1, kind: input, shape index: {}]   ;;  %s875_s2 = inlined_call_operand.vmem [shape: f32[2,256], index: 2, kind: input, shape index: {}]   ;;  %s876_s3 = inlined_call_operand.hbm [shape: f32[6,256], index: 3, kind: output, shape index: {}]  }
   0x1   :  { %9 = vsyncpa [#allocation5], 0 }
   0x2   :  { %10 = vsyncpa [#allocation3], 0  ;;  %s25_s14 = sshll.u32 %s874_s1, 4  ;;  %s417_s17 = scalar_lea.hbm %s873_s0, 16  ;;  %s26_s14 = int_to_ptr.vmem [resolvable:$true] %s25_s14 }
   0x3   :  { %p418_p0 = scmp.ne.s32.totalorder %s873_s0, %s417_s17  ;;  %p421_p1 = scmp.lt.u32.totalorder %s417_s17, %s873_s0 }
   0x5   :  { %p423_p2 = pnand %p421_p1, %p418_p0 }
   0x7   :  { %426 = shalt.err (!%p423_p2)
}
   0x8   :  { %s467_s22 = smov [#allocation2]   ;;  %s427_s1 = scalar_lea.vmem %s26_s14, 16 }
   0x9   :  { %18 = dma.hbm_to_smem %s873_s0, 16, %s467_s22, [#allocation4]  }
   0xa   :  { %p428_p3 = scmp.ne.s32.totalorder %s26_s14, %s427_s1  ;;  %p432_p4 = scmp.lt.s32.totalorder %s26_s14, %s26_s14 }
   0xb   :  { %p433_p5 = scmp.lt.s32.totalorder %s427_s1, %s427_s1 }
   0xd   :  { %p434_p6 = por %p433_p5, %p432_p4 }
   0xf   :  { %p435_p7 = pnand %p434_p6, %p428_p3 }
  0x11   :  { %438 = shalt.err (!%p435_p7)
}
  0x12   :  { %s468_s25 = smov [#allocation6]  }
  0x13   :  { %28 = dma.vmem_to_smem %s26_s14, 16, %s468_s25, [#allocation5]  }
  0x14   :  { %461 = dma.done.wait [#allocation4], 16  }
  0x15   :  { %462 = vsyncadd [#allocation4], 4294967280 }
  0x16   :  { %463 = dma.done.wait [#allocation5], 16  }
  0x17   :  { %464 = vsyncadd [#allocation5], 4294967280 }
  0x18   :  { %37 = sfence }
  0x19   :  { %v39_v0 = vlaneseq  ;;  %v469_v1 = vmov 1983009808   ;;  %v38_v5 = vld [vmem:[%s875_s2] sm:$0xf]  ;;  %s470_s27 = smov 16   ;;  %s471_s28 = smov 17  }
  0x1a   :  { %v56_v2 = vunpack.c.l.s4 %v469_v1  ;;  %s472_s29 = smov 15   ;;  %s380_s30 = sld [smem:[#allocation2 + $0x4]] }
  0x1b   :  { %v59_v3 = vshrl.u32 %v39_v0, 7  ;;  %s390_s4 = sld [smem:[#allocation2 + $0xd]]  ;;  %s400_s5 = sld [smem:[#allocation2 + $0x16]]  ;;  %v523_v18 = vand.u32 127, %v39_v0 }
  0x1c   :  { %v57_v4 = vunpack.c.0.s8 %v56_v2  ;;  %s473_s6 = smov 1   ;;  %s474_s2 = smov 127  }
  0x1d   :  { %s475_s7 = smov 113   ;;  %s476_s8 = smov 112   ;;  %v536_v19 = vadd.s32 128, %v523_v18  ;;  %v44_v20 = vshra.s32 %v523_v18, 4  ;;  %v42_v21 = vand.u32 15, %v523_v18  ;;  %vm80_vm0 = vcmp.lt.s32.totalorder %v523_v18, 16 }
  0x1e   :  { %v60_v6 = vsub.s32 %v57_v4, %v59_v3  ;;  %s477_s9 = smov 111   ;;  %s525_s10 = sld [smem:[#allocation2 + $0x1]]  ;;  %vm89_vm6 = vcmp.lt.s32.totalorder %v523_v18, 15  ;;  %vm69_vm8 = vcmp.lt.s32.totalorder %v523_v18, 17  ;;  %vm100_vm9 = vcmp.lt.s32.totalorder %v523_v18, 1 }
  0x1f   :  { %s527_s11 = sld [smem:[#allocation2 + $0xa]]  ;;  %s529_s12 = sld [smem:[#allocation2 + $0x13]]  ;;  %v45_v22 = vshra.s32 %v536_v19, 4  ;;  %v43_v23 = vand.u32 15, %v536_v19  ;;  %vm573_vm1 = vcmp.ge.s32.totalorder %v44_v20, 1  ;;  %vm577_vm2 = vcmp.le.s32.totalorder %v42_v21, 14 }
  0x20   :  { %v61_v7 = vrot.slane %v38_v5, %v60_v6  ;;  %v172_v9 = vstv %s380_s30  ;;  %s531_s13 = sld [smem:[#allocation2 + $0x2]]  ;;  %s533_s14 = sld [smem:[#allocation2 + $0xb]]  ;;  %vm591_vm4 = vcmp.ge.s32.totalorder %v42_v21, 1  ;;  %vm92_vm10 = vmand %vm573_vm1, %vm577_vm2  ;;  %vm109_vm14 = vcmp.lt.s32.totalorder %v523_v18, 127 }
  0x21   :  { %v173_v10 = vmul.f32 %v172_v9, %v38_v5  ;;  %v240_v11 = vstv %s390_s4  ;;  %v314_v13 = vstv %s400_s5  ;;  %s538_s15 = sld [smem:[#allocation2 + $0x14]]  ;;  %s540_s16 = sld [smem:[#allocation6]]  ;;  %vm587_vm3 = vcmp.ge.s32.totalorder %v45_v22, 1  ;;  %vm72_vm11 = vmand %vm573_vm1, %vm591_vm4 }
  0x22   :  { %76 = vrot.lane.b32.xlu1 %v61_v7, %s470_s27  ;;  %65 = vrot.lane.b32.xlu0 %v61_v7, %s471_s28  ;;  %v62_v8 = vcombine.high %v61_v7, %v61_v7  ;;  %v241_v12 = vmul.f32 %v240_v11, %v38_v5  ;;  %v315_v15 = vmul.f32 %v314_v13, %v38_v5  ;;  %s542_s17 = sld [smem:[#allocation2]]  ;;  %s544_s18 = sld [smem:[#allocation6 + $0x1]]  ;;  %vm599_vm5 = vcmp.le.s32.totalorder %v43_v23, 14 }
  0x23   :  { %v517_v14 = vrot.slane %v173_v10, %v60_v6  ;;  %s546_s19 = sld [smem:[#allocation2 + $0x9]]  ;;  %s548_s20 = sld [smem:[#allocation6 + $0x2]]  ;;  %vm604_vm7 = vcmp.ge.s32.totalorder %v43_v23, 1  ;;  %vm93_vm12 = vmand %vm587_vm3, %vm599_vm5  ;;  %vm706_vm15 = vcmp.le.s32.totalorder %v44_v20, 14 }
  0x24   :  { %v519_v16 = vrot.slane %v241_v12, %v60_v6  ;;  %v521_v17 = vrot.slane %v315_v15, %v60_v6  ;;  %s552_s21 = sld [smem:[#allocation2 + $0x12]]  ;;  %s554_s22 = sld [smem:[#allocation2 + $0x3]]  ;;  %v154_v30 = vstv %s525_s10  ;;  %vm73_vm13 = vmand %vm587_vm3, %vm604_vm7 }
  0x25   :  { %s557_s23 = sld [smem:[#allocation2 + $0xc]]  ;;  %s559_s24 = sld [smem:[#allocation2 + $0x15]]  ;;  %v222_v31 = vstv %s527_s11  ;;  %v296_v32 = vstv %s529_s12  ;;  %v182_v48 = vcombine.high %v517_v14, %v517_v14 }
  0x26   :  { %85 = vrot.lane.b32.xlu0 %v61_v7, %s472_s29  ;;  %78 = vrot.lane.b32.xlu1 %v62_v8, %s470_s27  ;;  %s562_s1 = sld [smem:[#allocation2 + $0x5]]  ;;  %s564_s25 = sld [smem:[#allocation2 + $0xe]]  ;;  %v160_v33 = vstv %s531_s13  ;;  %v228_v36 = vstv %s533_s14  ;;  %v250_v54 = vcombine.high %v519_v16, %v519_v16  ;;  %v324_v55 = vcombine.high %v521_v17, %v521_v17 }
  0x27   :  { %s567_s0 = sld [smem:[#allocation2 + $0x17]]  ;;  %s569_s26 = sld [smem:[#allocation2 + $0x6]]  ;;  %v302_v37 = vstv %s538_s15  ;;  %v146_v38 = vstv %s540_s16 }
  0x28   :  { %s581_s27 = sld [smem:[#allocation2 + $0xf]]  ;;  %s597_s30 = sld [smem:[#allocation2 + $0x10]]  ;;  %v148_v39 = vstv %s542_s17  ;;  %v214_v40 = vstv %s544_s18 }
  0x29   :  { %s609_s4 = sld [smem:[#allocation2 + $0x19]]  ;;  %s611_s5 = sld [smem:[#allocation2 + $0x8]]  ;;  %v216_v41 = vstv %s546_s19  ;;  %v288_v42 = vstv %s548_s20 }
  0x2a   :  { %87 = vrot.lane.b32.xlu1 %v62_v8, %s472_s29  ;;  %67 = vrot.lane.b32.xlu0 %v62_v8, %s471_s28  ;;  %s583_s28 = sld [smem:[#allocation2 + $0x18]]  ;;  %s595_s29 = sld [smem:[#allocation2 + $0x7]]  ;;  %v290_v43 = vstv %s552_s21  ;;  %v166_v44 = vstv %s554_s22 }
  0x2b   :  { %v234_v45 = vstv %s557_s23  ;;  %v308_v46 = vstv %s559_s24 }
  0x2c   :  { %v188_v47 = vstv %s562_s1  ;;  %v256_v49 = vstv %s564_s25 }
  0x2d   :  { %v330_v50 = vstv %s567_s0  ;;  %v194_v51 = vstv %s569_s26 }
  0x2e   :  { %98 = vrot.lane.b32.xlu1 %v62_v8, %s473_s6  ;;  %96 = vrot.lane.b32.xlu0 %v61_v7, %s473_s6  ;;  %s617_s6 = sld [smem:[#allocation2 + $0x11]]  ;;  %v262_v56 = vstv %s581_s27  ;;  %v268_v61 = vstv %s597_s30 }
  0x2f   :  { %v342_v0 = vstv %s609_s4  ;;  %v206_v1 = vstv %s611_s5 }
  0x30   :  { %v336_v57 = vstv %s583_s28  ;;  %v200_v60 = vstv %s595_s29 }
  0x32   :  { %107 = vrot.lane.b32.xlu1 %v62_v8, %s474_s2  ;;  %105 = vrot.lane.b32.xlu0 %v61_v7, %s474_s2  ;;  %s619_s2 = sld [smem:[#allocation2 + $0x1a]] }
  0x34   :  { %v274_v4 = vstv %s617_s6 }
  0x36   :  { %116 = vrot.lane.b32.xlu1 %v62_v8, %s475_s7  ;;  %114 = vrot.lane.b32.xlu0 %v61_v7, %s475_s7  ;;  %s478_s7 = smov [#allocation7]  }
  0x38   :  { %v348_v5 = vstv %s619_s2 }
  0x3a   :  { %127 = vrot.lane.b32.xlu1 %v62_v8, %s476_s8  ;;  %125 = vrot.lane.b32.xlu0 %v61_v7, %s476_s8  ;;  %s367_s8 = sshll.u32 %s478_s7, 4  ;;  %s368_s8 = int_to_ptr.vmem [resolvable:$true] %s367_s8 }
  0x3b   :  { %p444_p9 = scmp.lt.s32.totalorder %s368_s8, %s368_s8 }
  0x3e   :  { %136 = vrot.lane.b32.xlu1 %v62_v8, %s477_s9  ;;  %134 = vrot.lane.b32.xlu0 %v61_v7, %s477_s9  ;;  %s439_s9 = scalar_lea.vmem %s368_s8, 256 }
  0x3f   :  { %p440_p8 = scmp.ne.s32.totalorder %s368_s8, %s439_s9  ;;  %p445_p10 = scmp.lt.s32.totalorder %s439_s9, %s439_s9 }
  0x41   :  { %p446_p11 = por %p445_p10, %p444_p9 }
  0x43   :  { %p447_p12 = pnand %p446_p11, %p440_p8 }
  0x94   :  { %v77_v34 = vpop.permute.xlu1 %76  ;;  %v66_v35 = vpop.permute.xlu0 %65 }
  0x98   :  { %v86_v52 = vpop.permute.xlu0 %85  ;;  %v79_v53 = vpop.permute.xlu1 %78 }
  0x99   :  { %v81_v58 = vsel %vm80_vm0, %v77_v34, %v79_v53  ;;  %v82_v59 = vsel %vm80_vm0, %v79_v53, %v77_v34  ;;  %vm720_vm0 = vcmp.le.s32.totalorder %v45_v22, 14 }
  0x9a   :  { %v83_v62 = vsel %vm573_vm1, %v82_v59, 0.0  ;;  %v84_v63 = vsel %vm587_vm3, %v81_v58, 0.0  ;;  %vm118_vm1 = vcmp.lt.s32.totalorder %v523_v18, 113  ;;  %vm129_vm3 = vcmp.lt.s32.totalorder %v523_v18, 112 }
  0x9b   :  { %v155_v2 = vmul.f32 %v154_v30, %v83_v62  ;;  %v156_v3 = vmul.f32 %v154_v30, %v84_v63  ;;  %v223_v6 = vmul.f32 %v222_v31, %v83_v62  ;;  %v224_v7 = vmul.f32 %v222_v31, %v84_v63 }
  0x9c   :  { %v297_v8 = vmul.f32 %v296_v32, %v83_v62  ;;  %v298_v9 = vmul.f32 %v296_v32, %v84_v63  ;;  %v88_v10 = vpop.permute.xlu1 %87  ;;  %v68_v11 = vpop.permute.xlu0 %67 }
  0x9d   :  { %v90_v12 = vsel %vm89_vm6, %v86_v52, %v88_v10  ;;  %v91_v13 = vsel %vm89_vm6, %v88_v10, %v86_v52  ;;  %v70_v15 = vsel %vm69_vm8, %v66_v35, %v68_v11  ;;  %v71_v21 = vsel %vm69_vm8, %v68_v11, %v66_v35  ;;  %vm121_vm8 = vmand %vm706_vm15, %vm591_vm4 }
  0x9e   :  { %v94_v23 = vsel %vm92_vm10, %v91_v13, 0.0  ;;  %v95_v30 = vsel %vm93_vm12, %v90_v12, 0.0  ;;  %v74_v31 = vsel %vm72_vm11, %v71_v21, 0.0  ;;  %v75_v32 = vsel %vm73_vm13, %v70_v15, 0.0 }
  0x9f   :  { %v161_v34 = vmul.f32 %v160_v33, %v94_v23  ;;  %v162_v35 = vmul.f32 %v160_v33, %v95_v30  ;;  %v229_v52 = vmul.f32 %v228_v36, %v94_v23  ;;  %v230_v53 = vmul.f32 %v228_v36, %v95_v30 }
  0xa0   :  { %v303_v58 = vmul.f32 %v302_v37, %v94_v23  ;;  %v304_v24 = vmul.f32 %v302_v37, %v95_v30  ;;  %v149_v59 = vmul.f32 %v148_v39, %v74_v31  ;;  %v150_v62 = vmul.f32 %v148_v39, %v75_v32  ;;  %v99_v26 = vpop.permute.xlu1 %98  ;;  %v97_v63 = vpop.permute.xlu0 %96 }
  0xa1   :  { %v217_v10 = vmul.f32 %v216_v41, %v74_v31  ;;  %v218_v11 = vmul.f32 %v216_v41, %v75_v32  ;;  %v291_v12 = vmul.f32 %v290_v43, %v74_v31  ;;  %v292_v13 = vmul.f32 %v290_v43, %v75_v32 }
  0xa2   :  { %v151_v36 = vadd.f32 %v149_v59, %v146_v38  ;;  %v152_v37 = vadd.f32 %v150_v62, %v146_v38  ;;  %v101_v39 = vsel %vm100_vm9, %v97_v63, %v99_v26  ;;  %v102_v15 = vsel %vm100_vm9, %v99_v26, %v97_v63  ;;  %vm122_vm9 = vmand %vm720_vm0, %vm604_vm7 }
  0xa3   :  { %v219_v20 = vadd.f32 %v217_v10, %v214_v40  ;;  %v220_v43 = vadd.f32 %v218_v11, %v214_v40  ;;  %v293_v21 = vadd.f32 %v291_v12, %v288_v42  ;;  %v294_v38 = vadd.f32 %v292_v13, %v288_v42 }
  0xa4   :  { %v157_v23 = vadd.f32 %v155_v2, %v151_v36  ;;  %v158_v30 = vadd.f32 %v156_v3, %v152_v37  ;;  %v103_v31 = vsel %vm591_vm4, %v102_v15, 0.0  ;;  %v104_v19 = vsel %vm604_vm7, %v101_v39, 0.0  ;;  %v108_v22 = vpop.permute.xlu1 %107  ;;  %v106_v32 = vpop.permute.xlu0 %105  ;;  %vm141_vm4 = vmand %vm706_vm15, %vm577_vm2 }
  0xa5   :  { %v225_v40 = vadd.f32 %v223_v6, %v219_v20  ;;  %v226_v59 = vadd.f32 %v224_v7, %v220_v43  ;;  %v299_v62 = vadd.f32 %v297_v8, %v293_v21  ;;  %v300_v26 = vadd.f32 %v298_v9, %v294_v38  ;;  %vm142_vm7 = vmand %vm720_vm0, %vm599_vm5 }
  0xa6   :  { %v163_v42 = vadd.f32 %v161_v34, %v157_v23  ;;  %v164_v2 = vadd.f32 %v162_v35, %v158_v30  ;;  %v167_v3 = vmul.f32 %v166_v44, %v103_v31  ;;  %v168_v63 = vmul.f32 %v166_v44, %v104_v19 }
  0xa7   :  { %v231_v10 = vadd.f32 %v229_v52, %v225_v40  ;;  %v232_v11 = vadd.f32 %v230_v53, %v226_v59  ;;  %v305_v12 = vadd.f32 %v303_v58, %v299_v62  ;;  %v306_v13 = vadd.f32 %v304_v24, %v300_v26 }
  0xa8   :  { %v169_v36 = vadd.f32 %v167_v3, %v163_v42  ;;  %v170_v6 = vadd.f32 %v168_v63, %v164_v2  ;;  %v235_v7 = vmul.f32 %v234_v45, %v103_v31  ;;  %v236_v8 = vmul.f32 %v234_v45, %v104_v19  ;;  %v117_v9 = vpop.permute.xlu1 %116  ;;  %v115_v34 = vpop.permute.xlu0 %114 }
  0xa9   :  { %v309_v35 = vmul.f32 %v308_v46, %v103_v31  ;;  %v310_v44 = vmul.f32 %v308_v46, %v104_v19  ;;  %v110_v52 = vsel %vm109_vm14, %v106_v32, %v108_v22  ;;  %v111_v53 = vsel %vm109_vm14, %v108_v22, %v106_v32 }
  0xaa   :  { %v237_v58 = vadd.f32 %v235_v7, %v231_v10  ;;  %v238_v24 = vadd.f32 %v236_v8, %v232_v11  ;;  %v185_v45 = vadd.f32 %v517_v14, %v169_v36  ;;  %v186_v37 = vadd.f32 %v182_v48, %v170_v6 }
  0xab   :  { %v311_v39 = vadd.f32 %v309_v35, %v305_v12  ;;  %v312_v15 = vadd.f32 %v310_v44, %v306_v13  ;;  %v112_v46 = vsel %vm577_vm2, %v110_v52, 0.0  ;;  %v113_v20 = vsel %vm599_vm5, %v111_v53, 0.0 }
  0xac   :  { %vm138_vm6 = vcmp.lt.s32.totalorder %v523_v18, 111  ;;  %v253_v43 = vadd.f32 %v519_v16, %v237_v58  ;;  %v254_v21 = vadd.f32 %v250_v54, %v238_v24  ;;  %v189_v14 = vmul.f32 %v188_v47, %v112_v46  ;;  %v126_v54 = vpop.permute.xlu0 %125 }
  0xad   :  { %v190_v48 = vmul.f32 %v188_v47, %v113_v20  ;;  %v327_v38 = vadd.f32 %v521_v17, %v311_v39  ;;  %v328_v23 = vadd.f32 %v324_v55, %v312_v15  ;;  %v257_v30 = vmul.f32 %v256_v49, %v112_v46  ;;  %v128_v47 = vpop.permute.xlu1 %127 }
  0xae   :  { %v258_v16 = vmul.f32 %v256_v49, %v113_v20  ;;  %v191_v31 = vadd.f32 %v189_v14, %v185_v45  ;;  %v331_v17 = vmul.f32 %v330_v50, %v112_v46  ;;  %v332_v55 = vmul.f32 %v330_v50, %v113_v20 }
  0xaf   :  { %v192_v19 = vadd.f32 %v190_v48, %v186_v37  ;;  %v259_v49 = vadd.f32 %v257_v30, %v253_v43  ;;  %v119_v29 = vsel %vm118_vm1, %v115_v34, %v117_v9  ;;  %v120_v32 = vsel %vm118_vm1, %v117_v9, %v115_v34 }
  0xb0   :  { %v260_v22 = vadd.f32 %v258_v16, %v254_v21  ;;  %v333_v40 = vadd.f32 %v331_v17, %v327_v38  ;;  %v334_v59 = vadd.f32 %v332_v55, %v328_v23  ;;  %v123_v62 = vsel %vm121_vm8, %v119_v29, 0.0  ;;  %v135_v6 = vpop.permute.xlu0 %134 }
  0xb1   :  { %v124_v26 = vsel %vm122_vm9, %v120_v32, 0.0  ;;  %v195_v42 = vmul.f32 %v194_v51, %v123_v62  ;;  %v263_v2 = vmul.f32 %v262_v56, %v123_v62  ;;  %v337_v63 = vmul.f32 %v336_v57, %v123_v62  ;;  %v137_v36 = vpop.permute.xlu1 %136 }
  0xb2   :  { %v196_v50 = vmul.f32 %v194_v51, %v124_v26  ;;  %v264_v3 = vmul.f32 %v262_v56, %v124_v26  ;;  %v338_v10 = vmul.f32 %v336_v57, %v124_v26  ;;  %v130_v27 = vsel %vm129_vm3, %v126_v54, %v128_v47 }
  0xb3   :  { %v131_v11 = vsel %vm129_vm3, %v128_v47, %v126_v54  ;;  %v197_v12 = vadd.f32 %v195_v42, %v191_v31  ;;  %v265_v13 = vadd.f32 %v263_v2, %v259_v49  ;;  %v339_v7 = vadd.f32 %v337_v63, %v333_v40 }
  0xb4   :  { %v198_v51 = vadd.f32 %v196_v50, %v192_v19  ;;  %v266_v56 = vadd.f32 %v264_v3, %v260_v22  ;;  %v340_v8 = vadd.f32 %v338_v10, %v334_v59  ;;  %v132_v57 = vsel %vm706_vm15, %v130_v27, 0.0 }
  0xb5   :  { %v133_v9 = vsel %vm720_vm0, %v131_v11, 0.0  ;;  %v201_v34 = vmul.f32 %v200_v60, %v132_v57  ;;  %v269_v44 = vmul.f32 %v268_v61, %v132_v57  ;;  %v343_v53 = vmul.f32 %v342_v0, %v132_v57 }
  0xb6   :  { %v202_v35 = vmul.f32 %v200_v60, %v133_v9  ;;  %v270_v52 = vmul.f32 %v268_v61, %v133_v9  ;;  %v344_v58 = vmul.f32 %v342_v0, %v133_v9  ;;  %v139_v60 = vsel %vm138_vm6, %v135_v6, %v137_v36 }
  0xb7   :  { %v140_v24 = vsel %vm138_vm6, %v137_v36, %v135_v6  ;;  %v203_v61 = vadd.f32 %v201_v34, %v197_v12  ;;  %v271_v28 = vadd.f32 %v269_v44, %v265_v13  ;;  %v345_v41 = vadd.f32 %v343_v53, %v339_v7 }
  0xb8   :  { %v204_v45 = vadd.f32 %v202_v35, %v198_v51  ;;  %v272_v37 = vadd.f32 %v270_v52, %v266_v56  ;;  %v346_v39 = vadd.f32 %v344_v58, %v340_v8  ;;  %v143_v15 = vsel %vm141_vm4, %v139_v60, 0.0 }
  0xb9   :  { %v144_v0 = vsel %vm142_vm7, %v140_v24, 0.0  ;;  %v207_v46 = vmul.f32 %v206_v1, %v143_v15  ;;  %v275_v18 = vmul.f32 %v274_v4, %v143_v15  ;;  %v349_v21 = vmul.f32 %v348_v5, %v143_v15 }
  0xba   :  { %v208_v20 = vmul.f32 %v206_v1, %v144_v0  ;;  %v276_v43 = vmul.f32 %v274_v4, %v144_v0  ;;  %v350_v14 = vmul.f32 %v348_v5, %v144_v0 }
  0xbb   :  { %v209_v48 = vadd.f32 %v207_v46, %v203_v61  ;;  %v277_v33 = vadd.f32 %v275_v18, %v271_v28  ;;  %v351_v25 = vadd.f32 %v349_v21, %v345_v41 }
  0xbc   :  { %v210_v38 = vadd.f32 %v208_v20, %v204_v45  ;;  %v278_v23 = vadd.f32 %v276_v43, %v272_v37  ;;  %v352_v30 = vadd.f32 %v350_v14, %v346_v39 }
  0xbd   :  { %211 = vst [vmem:[#allocation7] sm:$0x3] %v209_v48  ;;  %v281_v16 = vrot.slane %v277_v33, 6  ;;  %v355_v47 = vrot.slane %v351_v25, 4 }
  0xbe   :  { %212 = vst [vmem:[#allocation7 + $0x8] sm:$0x3] %v210_v38  ;;  %v282_v1 = vrot.slane %v278_v23, 6  ;;  %v356_v54 = vrot.slane %v352_v30, 4 }
  0xbf   :  { %285 = vst [vmem:[#allocation7] sm:$0xc] %v281_v16  ;;  %359 = vst [vmem:[#allocation7] sm:$0x30] %v355_v47 }
  0xc0   :  { %286 = vst [vmem:[#allocation7 + $0x8] sm:$0xc] %v282_v1  ;;  %360 = vst [vmem:[#allocation7 + $0x8] sm:$0x30] %v356_v54 }
  0xc1   :  { %450 = shalt.err (!%p447_p12)
}
  0xc2   :  { %s451_s12 = scalar_lea.hbm %s876_s3, 256 }
  0xc3   :  { %p452_p13 = scmp.ne.s32.totalorder %s876_s3, %s451_s12  ;;  %p455_p0 = scmp.lt.u32.totalorder %s451_s12, %s876_s3 }
  0xc5   :  { %p457_p1 = pnand %p455_p0, %p452_p13 }
  0xc7   :  { %460 = shalt.err (!%p457_p1)
}
  0xc8   :  { %370 = dma.vmem_to_hbm [thread:$0]  %s368_s8, 256, %s876_s3, [#allocation3]  }
  0xc9   :  { %465 = dma.done.wait [#allocation3], 256  }
  0xca   :  { %466 = vsyncadd [#allocation3], 4294967040 }
  0xcb   :  { %374 = vsyncpa [#allocation3], 1 }
  0xcc   :  { %375 = vsyncpa [#allocation4], 1 }
  0xcd   :  { %376 = vsyncpa [#allocation5], 1 }

</bundles_post_ra>
